<compile_context>
chip_gen: v7x
topology: tpu7x:2x2x1
jax: 0.10.0
libtpu: 0.0.40
codegen_flags: <defaults>
</compile_context>

<pallas_src>
import functools
import math

import jax
import jax.numpy as jnp
from jax import lax
from jax.experimental import pallas as pl
from jax.experimental.pallas import tpu as pltpu


def _unit2d_kernel(x_ref, w_ref, shift_ref, o_ref, xcol_ref, *xpad_scratch,
                   K, stride, pad, T, T_out, V, B_blk, compute_dtype):
    """Temporal conv (im2col + single MXU matmul per sample) + folded BN + ReLU.

    x_ref:     (B_blk, C_in, T*V)        [stride==1]  or (B_blk, C_in, T, V)
    w_ref:     (C_out, K*C_in)           conv weights with BN scale folded in
    shift_ref: (C_out, 1)                conv bias + BN shift, folded
    o_ref:     (B_blk, C_out, T_out*V)
    xcol_ref:  (K*C_in, T_out*V)         im2col scratch (VMEM, compute_dtype)
    xpad_scratch: optional (C_in, T+2*pad, V) scratch, only for stride > 1
    """
    C_in = x_ref.shape[1]
    L = T_out * V
    cdt = compute_dtype

    # ---- constant zero regions (temporal padding) of the im2col scratch ----
    # Only the tiny pad strips are written; rewritten every grid step so the
    # kernel stays correct when the "parallel" axis is split across TensorCores
    # (each core owns its own scratch instance).
    if stride == 1:
        if pad > 0:
            for k in range(K):
                d = k - pad
                t0 = max(0, -d)
                t1 = min(T_out, T - d)
                r0, r1 = k * C_in, (k + 1) * C_in
                if t0 > 0:
                    xcol_ref[r0:r1, :t0 * V] = jnp.zeros((C_in, t0 * V), cdt)
                if t1 < T_out:
                    xcol_ref[r0:r1, t1 * V:] = jnp.zeros(
                        (C_in, (T_out - t1) * V), cdt)
    else:
        xpad_ref = xpad_scratch[0]
        if pad > 0:
            xpad_ref[:, :pad, :] = jnp.zeros((C_in, pad, V), cdt)
            xpad_ref[:, pad + T:, :] = jnp.zeros((C_in, pad, V), cdt)

    w = w_ref[...]           # (C_out, K*C_in)  -- BN scale already folded in
    shift = shift_ref[...]   # (C_out, 1)       -- conv bias already folded in

    for b in range(B_blk):   # static unroll; B_blk is small
        if stride == 1:
            xb = x_ref[b].astype(cdt)            # (C_in, T*V), cast once
            # Fill the im2col scratch with K shifted, contiguous lane slices.
            for k in range(K):
                d = k - pad
                t0 = max(0, -d)
                t1 = min(T_out, T - d)
                xcol_ref[k * C_in:(k + 1) * C_in, t0 * V:t1 * V] = (
                    xb[:, (t0 + d) * V:(t1 + d) * V])
        else:
            # General-stride fallback: padded 3-D scratch + strided tap slices.
            xpad_ref = xpad_scratch[0]
            xpad_ref[:, pad:pad + T, :] = x_ref[b].astype(cdt)
            xfull = xpad_ref[...]
            for k in range(K):
                xk = lax.slice(xfull, (0, k, 0),
                               (C_in, k + stride * (T_out - 1) + 1, V),
                               (1, stride, 1))            # (C_in, T_out, V)
                xcol_ref[k * C_in:(k + 1) * C_in, :] = xk.reshape(C_in, L)

        y = jnp.dot(w, xcol_ref[...],
                    preferred_element_type=jnp.float32)   # (C_out, L) on MXU
        y = jnp.maximum(y + shift, 0.0)                   # folded BN+bias, ReLU
        o_ref[b] = y.astype(o_ref.dtype)


def unit2d_forward(x_nchw, weight, bias, gamma, beta, running_mean, running_var,
                   *, kernel_size, stride=1, eps=1e-5,
                   compute_dtype=jnp.float32, batch_block=None):
    """Forward of Unit2D (dim=2 branch).  x_nchw: (N, C_in, T, V)."""
    N, C_in, T, V = x_nchw.shape
    C_out = weight.shape[0]
    K = kernel_size
    pad = (K - 1) // 2
    T_pad = T + 2 * pad
    T_out = (T_pad - K) // stride + 1
    L = T_out * V
    in_dtype = x_nchw.dtype
    in_isz = jnp.dtype(in_dtype).itemsize
    cd_isz = jnp.dtype(compute_dtype).itemsize

    # ---- trace-time parameter folding (zero runtime cost) ------------------
    scale = gamma / jnp.sqrt(running_var + eps)                 # (C_out,)
    shift = (bias - running_mean) * scale + beta                # bias + BN shift
    # PyTorch weight (C_out, C_in, K, 1) -> (C_out, K*C_in), column = k*C_in + c
    w2 = jnp.transpose(weight[..., 0], (0, 2, 1)).reshape(C_out, K * C_in)
    w2 = (w2 * scale[:, None]).astype(compute_dtype)
    shift2 = shift.reshape(C_out, 1).astype(jnp.float32)

    # ---- VMEM-aware batch block (amortize ~0.35us/step grid overhead) ------
    # Per-step VMEM:  2x double-buffered x tile + 2x out tile + im2col scratch
    # (+ padded scratch for stride>1) + weights.
    fixed = (K * C_in * L * cd_isz           # im2col scratch
             + C_out * K * C_in * cd_isz     # folded weights
             + C_out * 4)                    # shift
    if stride != 1:
        fixed += C_in * T_pad * V * cd_isz
    per_b = 2 * C_in * T * V * in_isz + 2 * C_out * L * in_isz
    budget = 24 << 20                        # conservative scoped-VMEM target
    if batch_block is None:
        b_blk = max(1, min(N, (budget - fixed) // max(per_b, 1)))
        while b_blk > 1 and (N + b_blk - 1) // b_blk < 2:
            b_blk -= 1      # keep >= 2 grid steps for megacore / v7x 2 TCs
        while N % b_blk != 0:
            b_blk -= 1
    else:
        b_blk = batch_block
        assert N % b_blk == 0
    grid = (N // b_blk,)

    est_vmem = fixed + b_blk * per_b
    vmem_limit = None
    if est_vmem > (14 << 20):               # above the smallest default budget
        vmem_limit = min(int(1.4 * est_vmem), 56 << 20)

    # ---- HBM views: merging trailing dims is a free metadata reshape -------
    if stride == 1:
        x_in = x_nchw.reshape(N, C_in, T * V)
        x_spec = pl.BlockSpec((b_blk, C_in, T * V), lambda n: (n, 0, 0))
    else:
        x_in = x_nchw
        x_spec = pl.BlockSpec((b_blk, C_in, T, V), lambda n: (n, 0, 0, 0))

    scratch_shapes = [pltpu.VMEM((K * C_in, L), compute_dtype)]   # im2col
    if stride != 1:
        scratch_shapes.append(pltpu.VMEM((C_in, T_pad, V), compute_dtype))

    kernel = functools.partial(
        _unit2d_kernel, K=K, stride=stride, pad=pad, T=T, T_out=T_out, V=V,
        B_blk=b_blk, compute_dtype=compute_dtype)

    cost = pl.CostEstimate(
        flops=int(2 * N * L * K * C_in * C_out),
        transcendentals=0,
        bytes_accessed=int(N * C_in * T * V * in_isz
                           + C_out * K * C_in * cd_isz
                           + N * C_out * L * in_isz))

    out_flat = pl.pallas_call(
        kernel,
        out_shape=jax.ShapeDtypeStruct((N, C_out, L), in_dtype),
        grid=grid,
        in_specs=[
            x_spec,
            pl.BlockSpec((C_out, K * C_in), lambda n: (0, 0)),
            pl.BlockSpec((C_out, 1), lambda n: (0, 0)),
        ],
        out_specs=pl.BlockSpec((b_blk, C_out, L), lambda n: (n, 0, 0)),
        scratch_shapes=scratch_shapes,
        compiler_params=pltpu.CompilerParams(
            dimension_semantics=("parallel",),
            vmem_limit_bytes=vmem_limit),
        cost_estimate=cost,
    )(x_in, w2, shift2)

    # Back to the PyTorch NCHW convention — another free metadata reshape.
    return out_flat.reshape(N, C_out, T_out, V)


def _reference(x_nchw, weight, bias, gamma, beta, running_mean, running_var,
               *, kernel_size, stride=1, eps=1e-5):
    pad = (kernel_size - 1) // 2
    y = lax.conv_general_dilated(
        x_nchw, weight,
        window_strides=(stride, 1),
        padding=((pad, pad), (0, 0)),
        dimension_numbers=("NCHW", "OIHW", "NCHW"))
    y = y + bias.reshape(1, -1, 1, 1)
    scale = gamma / jnp.sqrt(running_var + eps)
    shift = beta - running_mean * scale
    y = y * scale.reshape(1, -1, 1, 1) + shift.reshape(1, -1, 1, 1)
    return jnp.maximum(y, 0.0)


if __name__ == "__main__":
    # Small shapes consistent with Unit2D(D_in=4, D_out=8, kernel_size=3)
    N, C_in, T, V = 2, 4, 16, 16
    C_out, K, stride = 8, 3, 1

    key = jax.random.PRNGKey(0)
    k_x, k_w, k_b, k_g, k_be, k_m, k_v = jax.random.split(key, 7)

    x = jax.random.normal(k_x, (N, C_in, T, V), dtype=jnp.float32)

    # conv_init: normal(0, sqrt(2 / (D_out * prod(kernel_size))))
    n_fan = C_out * K * 1
    weight = jax.random.normal(k_w, (C_out, C_in, K, 1), dtype=jnp.float32) \
        * math.sqrt(2.0 / n_fan)
    bias = 0.1 * jax.random.normal(k_b, (C_out,), dtype=jnp.float32)

    # BatchNorm2d parameters / running stats (deterministic, nontrivial)
    gamma = jax.random.uniform(k_g, (C_out,), minval=0.5, maxval=1.5,
                               dtype=jnp.float32)
    beta = 0.1 * jax.random.normal(k_be, (C_out,), dtype=jnp.float32)
    running_mean = 0.1 * jax.random.normal(k_m, (C_out,), dtype=jnp.float32)
    running_var = jax.random.uniform(k_v, (C_out,), minval=0.5, maxval=1.5,
                                     dtype=jnp.float32)

    ref = _reference(x, weight, bias, gamma, beta, running_mean, running_var,
                     kernel_size=K, stride=stride)

    # --- f32 compute path (exact semantics of the PyTorch module) ----------
    out = unit2d_forward(x, weight, bias, gamma, beta, running_mean,
                         running_var, kernel_size=K, stride=stride,
                         compute_dtype=jnp.float32)
    out = jax.block_until_ready(out)
    assert out.shape == (N, C_out, T, V), out.shape
    assert jnp.allclose(out, ref, atol=1e-4, rtol=1e-4), \
        float(jnp.max(jnp.abs(out - ref)))

    # --- bf16 MXU-input path (f32 accumulation), loose tolerance ------------
    out_bf16 = unit2d_forward(x, weight, bias, gamma, beta, running_mean,
                              running_var, kernel_size=K, stride=stride,
                              compute_dtype=jnp.bfloat16)
    out_bf16 = jax.block_until_ready(out_bf16)
    rel_err = jnp.linalg.norm((out_bf16 - ref).ravel()) / \
        (jnp.linalg.norm(ref.ravel()) + 1e-12)
    assert float(rel_err) < 2e-2, float(rel_err)

    print("KERNEL_OK")
</pallas_src>

<mosaic_0001>
module attributes {stable_mosaic.version = 11 : i64} {
  func.func @_unit2d_kernel(%arg0: i32, %arg1: memref<1x4x256xf32, #tpu.memory_space<vmem>>, %arg2: memref<8x12xf32, #tpu.memory_space<vmem>>, %arg3: memref<8x1xf32, #tpu.memory_space<vmem>>, %arg4: memref<1x8x256xf32, #tpu.memory_space<vmem>>, %arg5: memref<12x256xf32, #tpu.memory_space<vmem>>) attributes {dimension_semantics = [#tpu.dimension_semantics<parallel>], iteration_bounds = array<i64: 2>, scalar_prefetch = 0 : i64, scratch_operands = 1 : i64, tpu.core_type = #tpu.core_type<tc>, window_params = [{transform_indices = @transform_0, window_bounds = array<i64: 1, 4, 256>}, {pipeline_mode = #tpu.pipeline_mode<synchronous>, transform_indices = @transform_1, window_bounds = array<i64: 8, 12>}, {pipeline_mode = #tpu.pipeline_mode<synchronous>, transform_indices = @transform_2, window_bounds = array<i64: 8, 1>}, {transform_indices = @transform_3, window_bounds = array<i64: 1, 8, 256>}]} {
    %cst = arith.constant 0.000000e+00 : f32
    %0 = vector.broadcast %cst : f32 to vector<4x16xf32>
    %c0 = arith.constant 0 : index
    %c0_0 = arith.constant 0 : index
    %1 = vector.load %arg5[%c0, %c0_0] : memref<12x256xf32, #tpu.memory_space<vmem>>, vector<4x16xf32>
    tpu.vector_store %arg5[%c0, %c0_0], %0 {strides = array<i32>} : memref<12x256xf32, #tpu.memory_space<vmem>>, vector<4x16xf32>,
    %cst_1 = arith.constant 0.000000e+00 : f32
    %2 = vector.broadcast %cst_1 : f32 to vector<4x16xf32>
    %c8 = arith.constant 8 : index
    %c240 = arith.constant 240 : index
    %3 = vector.load %arg5[%c8, %c240] : memref<12x256xf32, #tpu.memory_space<vmem>>, vector<4x16xf32>
    tpu.vector_store %arg5[%c8, %c240], %2 {strides = array<i32>} : memref<12x256xf32, #tpu.memory_space<vmem>>, vector<4x16xf32>,
    %c0_2 = arith.constant 0 : index
    %c0_3 = arith.constant 0 : index
    %4 = vector.load %arg2[%c0_2, %c0_3] : memref<8x12xf32, #tpu.memory_space<vmem>>, vector<8x12xf32>
    %c0_4 = arith.constant 0 : index
    %c0_5 = arith.constant 0 : index
    %5 = vector.load %arg3[%c0_4, %c0_5] : memref<8x1xf32, #tpu.memory_space<vmem>>, vector<8x1xf32>
    %c0_6 = arith.constant 0 : index
    %c0_7 = arith.constant 0 : index
    %c0_8 = arith.constant 0 : index
    %6 = vector.load %arg1[%c0_6, %c0_7, %c0_8] : memref<1x4x256xf32, #tpu.memory_space<vmem>>, vector<1x4x256xf32>
    %7 = vector.shape_cast %6 : vector<1x4x256xf32> to vector<4x256xf32>
    %8 = vector.extract_strided_slice %7 {offsets = [0, 0], sizes = [4, 240], strides = [1, 1]} : vector<4x256xf32> to vector<4x240xf32>
    %c0_9 = arith.constant 0 : index
    %c16 = arith.constant 16 : index
    %9 = vector.load %arg5[%c0_9, %c16] : memref<12x256xf32, #tpu.memory_space<vmem>>, vector<4x240xf32>
    tpu.vector_store %arg5[%c0_9, %c16], %8 {strides = array<i32>} : memref<12x256xf32, #tpu.memory_space<vmem>>, vector<4x240xf32>,
    %c4 = arith.constant 4 : index
    %c0_10 = arith.constant 0 : index
    %10 = vector.load %arg5[%c4, %c0_10] : memref<12x256xf32, #tpu.memory_space<vmem>>, vector<4x256xf32>
    tpu.vector_store %arg5[%c4, %c0_10], %7 {strides = array<i32>} : memref<12x256xf32, #tpu.memory_space<vmem>>, vector<4x256xf32>,
    %11 = vector.extract_strided_slice %7 {offsets = [0, 16], sizes = [4, 240], strides = [1, 1]} : vector<4x256xf32> to vector<4x240xf32>
    %c8_11 = arith.constant 8 : index
    %c0_12 = arith.constant 0 : index
    %12 = vector.load %arg5[%c8_11, %c0_12] : memref<12x256xf32, #tpu.memory_space<vmem>>, vector<4x240xf32>
    tpu.vector_store %arg5[%c8_11, %c0_12], %11 {strides = array<i32>} : memref<12x256xf32, #tpu.memory_space<vmem>>, vector<4x240xf32>,
    %c0_13 = arith.constant 0 : index
    %c0_14 = arith.constant 0 : index
    %13 = vector.load %arg5[%c0_13, %c0_14] : memref<12x256xf32, #tpu.memory_space<vmem>>, vector<12x256xf32>
    %cst_15 = arith.constant dense<0.000000e+00> : vector<8x256xf32>
    %14 = tpu.matmul %4, %13, %cst_15 {dimension_numbers = #tpu.dot_dimension_numbers<[1], [0], [0], [1], [0, 0, 1, 1], [], []>} : vector<8x12xf32>, vector<12x256xf32>, vector<8x256xf32> -> vector<8x256xf32>
    %15 = vector.broadcast %5 : vector<8x1xf32> to vector<8x256xf32>
    %16 = arith.addf %14, %15 : vector<8x256xf32>
    %cst_16 = arith.constant 0.000000e+00 : f32
    %17 = vector.broadcast %cst_16 : f32 to vector<8x256xf32>
    %18 = arith.maximumf %16, %17 : vector<8x256xf32>
    %c0_17 = arith.constant 0 : index
    %c0_18 = arith.constant 0 : index
    %c0_19 = arith.constant 0 : index
    %19 = vector.load %arg4[%c0_17, %c0_18, %c0_19] : memref<1x8x256xf32, #tpu.memory_space<vmem>>, vector<1x8x256xf32>
    %20 = vector.shape_cast %19 : vector<1x8x256xf32> to vector<8x256xf32>
    %21 = vector.shape_cast %18 : vector<8x256xf32> to vector<1x8x256xf32>
    tpu.vector_store %arg4[%c0_17, %c0_18, %c0_19], %21 {strides = array<i32>} : memref<1x8x256xf32, #tpu.memory_space<vmem>>, vector<1x8x256xf32>,
    return
  }
  func.func @transform_0(%arg0: i32) -> (i32, i32, i32) {
    %c0_i32 = arith.constant 0 : i32
    %c0_i32_0 = arith.constant 0 : i32
    %c0_i32_1 = arith.constant 0 : i32
    return %arg0, %c0_i32, %c0_i32_0 : i32, i32, i32
  }
  func.func @transform_1(%arg0: i32) -> (i32, i32) {
    %c0_i32 = arith.constant 0 : i32
    %c0_i32_0 = arith.constant 0 : i32
    %c0_i32_1 = arith.constant 0 : i32
    return %c0_i32, %c0_i32_0 : i32, i32
  }
  func.func @transform_2(%arg0: i32) -> (i32, i32) {
    %c0_i32 = arith.constant 0 : i32
    %c0_i32_0 = arith.constant 0 : i32
    %c0_i32_1 = arith.constant 0 : i32
    return %c0_i32, %c0_i32_0 : i32, i32
  }
  func.func @transform_3(%arg0: i32) -> (i32, i32, i32) {
    %c0_i32 = arith.constant 0 : i32
    %c0_i32_0 = arith.constant 0 : i32
    %c0_i32_1 = arith.constant 0 : i32
    return %arg0, %c0_i32, %c0_i32_0 : i32, i32, i32
  }
}

</mosaic_0001>

<bundles_post_ra>
// kernel: tpu_custom_call.1
= control target key start
LH: loop header
LB: loop body
LE: loop exit
PB: predicated region body
PF: predicated region fallthrough
CT: control target
= control target key end

     0   :  { %8 = vsyncpa [#allocation4], 0  ;;  %s774_s0 = inlined_call_operand.hbm [shape: f32[2,4,256], index: 0, kind: input, shape index: {}]   ;;  %s775_s1 = inlined_call_operand.vmem [shape: f32[8,12], index: 1, kind: input, shape index: {}]   ;;  %s776_s2 = inlined_call_operand.vmem [shape: f32[8,1], index: 2, kind: input, shape index: {}]   ;;  %s777_s3 = inlined_call_operand.hbm [shape: f32[2,8,256], index: 3, kind: output, shape index: {}]  }
   0x1   :  { %10 = vsyncpa [#allocation4 + $0x1], 0 }
   0x2   :  { %11 = vsyncpa [#allocation5], 0 }
   0x3   :  { %13 = vsyncpa [#allocation5 + $0x1], 0  ;;  %s606_s12 = smov 0   ;;  %s608_s13 = smov 0  }
   0x4   :  { %s610_s14 = smov 0   ;;  %s612_s15 = smov 0  }
   0x5 LB: > { %s627_s16 = sadd.s32 4294967295, %s577_s15   ;;  %s402_s17 = sadd.s32 4294967294, %s577_s15   ;;  %s577_s15 = sphi %s612_s15, %s792_s15   ;;  %s573_s14 = sphi %s610_s14, %s791_s14   ;;  %s569_s13 = sphi %s608_s13, %s790_s13   ;;  %s565_s12 = sphi %s606_s12, %s789_s12  }
   0x6   : > { %s631_s18 = sadd.s32 1, %s577_s15   ;;  %s26_s19 = sadd.s32 1, %s573_s14 }
   0x7   : > { %s23_s20 = ssub.s32 %s577_s15, %s631_s18  ;;  %p33_p0 = scmp.ne.s32.totalorder %s573_s14, %s569_s13 }
   0x8   : > { %p24_p1 = scmp.eq.s32.totalorder %s23_s20, 0  ;;  %p34_p2 = scmp.eq.s32.totalorder %s577_s15, 0 }
   0x9   : > { %p39_p3 = scmp.ne.s32.totalorder %s569_s13, %s565_s12  ;;  %p40_p4 = scmp.eq.s32.totalorder %s627_s16, 0 }
   0xa   : > { %s643_s21 = scalar_select %p24_p1, %s573_s14, %s26_s19  }
   0xb   : > { %p645_p5 = por %p34_p2, %p33_p0  ;;  %p649_p6 = por %p40_p4, %p39_p3 }
   0xc   : > { %p105_p7 = scmp.eq.s32.totalorder %s627_s16, 1  ;;  %p111_p8 = scmp.eq.s32.totalorder %s402_s17, 1 }
   0xd   : > { %p439_p10 = scmp.lt.s32.totalorder %s577_s15, 2  ;;  %s137_s26 = sand.u32 1, %s573_s14  }
   0xe   : > { %p656_p11 = por %p105_p7, %p33_p0  ;;  %p660_p12 = por %p111_p8, %p39_p3 }
   0xf   : > { %s419_s27 = sshll.u32 %s577_s15, 7  ;;  %s405_s28 = sshll.u32 %s137_s26, 3 }
  0x10   : > { %s781_s24 = scalar_select %p656_p11, 1, 0 }
  0x11   : > { %s782_s25 = scalar_select %p660_p12, 1, 0 }
  0x12   : > { %s669_s4 = scalar_lea.hbm %s774_s0, %s419_s27  ;;  %s141_s5 = scalar_lea.vmem [#allocation3], %s405_s28 }
  0x13   : > { %s149_s6 = sshll.u32 %s141_s5, 4  ;;  %p673_p13 = pnand %p439_p10, %p645_p5  ;;  %s677_s6 = int_to_ptr.vmem [resolvable:$true] %s149_s6 }
  0x14   : > { %s138_s8 = scalar_lea.sflag [#allocation4], %s137_s26  ;;  %s481_s9 = scalar_lea.hbm %s669_s4, 128 }
  0x15   : > { %p482_p2 = scmp.ne.s32.totalorder %s669_s4, %s481_s9  ;;  %p483_p3 = pneg %p673_p13 }
  0x16   : > { %s486_s17 = scalar_lea.hbm %s774_s0, 256  ;;  %p487_p5 = scmp.lt.u32.totalorder %s669_s4, %s774_s0 }
  0x17   : > { %p484_p4 = pnand %p483_p3, %p482_p2  ;;  %p488_p8 = scmp.lt.u32.totalorder %s486_s17, %s481_s9 }
  0x18   : > { %p490_p9 = scmp.lt.u32.totalorder %s481_s9, %s669_s4 }
  0x19   : > { %p485_p7 = pneg %p484_p4  ;;  %p489_p10 = por %p488_p8, %p487_p5 }
  0x1b   : > { %p491_p0 = por %p490_p9, %p489_p10 }
  0x1d   : > { %p492_p1 = pnand %p491_p0, %p485_p7 }
  0x1f   : > { %495 = shalt.err (!%p492_p1)
}
  0x20   : > { %s496_s22 = scalar_lea.vmem %s677_s6, 128  ;;  %s579_s26 = smov [#allocation3]  }
  0x21   : > { %p497_p2 = scmp.ne.s32.totalorder %s677_s6, %s496_s22  ;;  %s501_s27 = sshll.u32 %s579_s26, 4  ;;  %s502_s27 = int_to_ptr.vmem [resolvable:$false] %s501_s27 }
  0x22   : > { %s503_s28 = scalar_lea.vmem %s502_s27, 256  ;;  %p504_p11 = scmp.lt.s32.totalorder %s677_s6, %s502_s27 }
  0x23   : > { %p499_p4 = pnand %p497_p2, %p483_p3  ;;  %p505_p5 = scmp.lt.s32.totalorder %s503_s28, %s496_s22 }
  0x25   : > { %p500_p12 = pneg %p499_p4  ;;  %p506_p8 = por %p505_p5, %p504_p11 }
  0x27   : > { %p507_p9 = pnand %p506_p8, %p500_p12 }
  0x29   : > { %510 = shalt.err (!%p507_p9)
}
  0x2a   : > { %434 = dma.hbm_to_vmem [thread:$0]  (!%p673_p13), %s669_s4, 128, %s677_s6, %s138_s8  }
  0x2b   : > { %p784_p0 = scmp.lt.s32.totalorder %s577_s15, 3  ;;  %p785_p1 = scmp.ge.s32.totalorder %s577_s15, 1 }
  0x2d   : > { %p155_p3 = pnand %p785_p1, %p784_p0 }
  0x2e   : > { %s711_s29 = sand.u32 (!%p155_p3), 1, %s569_s13  }
  0x2f   : > { %158 = sbr.rel (%p155_p3) target bundleno = 422 (0x1a6), region = 32  ;;  %s409_s30 = sshll.u32 (!%p155_p3), %s711_s29, 3 }
  0x30   : > { %s161_s5 = scalar_lea.sflag (!%p155_p3), [#allocation4], %s711_s29  ;;  %s164_s9 = scalar_lea.vmem (!%p155_p3), [#allocation3], %s409_s30 }
  0x36   : > { %556 = dma.done.wait (%p649_p6), %s161_s5, 128  }
  0x37   : > { %558 = vsyncadd (%p649_p6), %s161_s5, 4294967168  ;;  %vm187_vm0 = vcmask 125952   ;;  %v580_v0 = vmov 0.0   ;;  %vm189_vm1 = vcmask 1044352   ;;  %v193_v1 = vld [vmem:[%s164_s9] sm:$0xff]  ;;  %s581_s4 = smov 112  }
  0x38   : > { %188 = vst.msk [vmem:[#allocation2] sm:$0xf] %vm187_vm0, %v580_v0  ;;  %306 = vmatprep.mubr.f32.mxu0 %v580_v0  ;;  %211 = vrot.lane.b32.xlu1 %v193_v1, %s581_s4  ;;  %v207_v2 = vcombine.low %v193_v1, %v193_v1  ;;  %210 = vst [vmem:[#allocation2 + $0x8] sm:$0xf0] %v193_v1  ;;  %s582_s6 = smov 16   ;;  %v195_v3 = vcombine.high %v193_v1, %v193_v1  ;;  %v192_v4 = vld [vmem:[%s776_s2] sm:$0xff] }
  0x39   : > { %190 = vst.msk [vmem:[#allocation2 + $0x18] sm:$0xf] %vm189_vm1, %v580_v0  ;;  %196 = vrot.lane.b32.xlu0 %v193_v1, %s582_s6  ;;  %v583_v5 = vmov 0   ;;  %vm204_vm2 = vcmask 1043584   ;;  %vm215_vm3 = vcmask 916480   ;;  %vm220_vm4 = vcmask 912384  }
  0x3a   : > { %209 = vst [vmem:[#allocation2] sm:$0xf0] %v207_v2  ;;  %478 = vset.pattern.permute.xlu0 %v583_v5  ;;  %vm200_vm5 = vcmask 130048   ;;  %vm235_vm6 = vcmask 1043456   ;;  %vm584_vm7 = vmmov 1   ;;  %v191_v18 = vld [vmem:[%s775_s1] sm:$0xff] }
  0x3b   : > { %vm422_vm8 = vmpackc.low %vm235_vm6, %vm584_vm7  ;;  %vm231_vm9 = vcmask 97280   ;;  %s410_s11 = sshll.u32 %s711_s29, 4  ;;  %s420_s17 = sshll.u32 %s627_s16, 8 }
  0x3c   : > { %213 = vrot.lane.b32.xlu1 %v195_v3, %s581_s4  ;;  %s186_s19 = scalar_lea.vmem [#allocation6], %s410_s11  ;;  %s730_s27 = scalar_lea.hbm %s777_s3, %s420_s17 }
  0x3d   : > { %198 = vrot.lane.b32.xlu0 %v195_v3, %s582_s6  ;;  %s332_s20 = sshll.u32 %s186_s19, 4  ;;  %s318_s28 = scalar_lea.sflag [#allocation5], %s711_s29  ;;  %s732_s20 = int_to_ptr.vmem [resolvable:$true] %s332_s20 }
  0x3e   : > { %s511_s30 = scalar_lea.vmem %s732_s20, 256  ;;  %p786_p11 = scmp.ne.s32.totalorder %s781_s24, 0 }
  0x3f   : > { %p512_p6 = scmp.ne.s32.totalorder %s732_s20, %s511_s30  ;;  %s585_s16 = smov [#allocation6]  }
  0x40   : > { %s515_s5 = sshll.u32 %s585_s16, 4  ;;  %s516_s5 = int_to_ptr.vmem [resolvable:$false] %s515_s5 }
  0x41   : > { %228 = vperm.xlu0 %478, %v192_v4   ;;  %p513_p12 = pnand %p512_p6, %p786_p11  ;;  %s517_s9 = scalar_lea.vmem %s516_s5, 512 }
  0x42   : > { %p518_p7 = scmp.lt.s32.totalorder %s732_s20, %s516_s5  ;;  %p519_p10 = scmp.lt.s32.totalorder %s517_s9, %s511_s30 }
  0x43   : > { %p514_p13 = pneg %p513_p12 }
  0x44   : > { %p520_p2 = por %p519_p10, %p518_p7 }
  0x46   : > { %p521_p4 = pnand %p520_p2, %p514_p13 }
  0xaa   : > { %v212_v6 = vpop.permute.xlu1 %211 }
  0xab   : > { %v197_v7 = vpop.permute.xlu0 %196 }
  0xac   : > { %205 = vst.msk [vmem:[#allocation2] sm:$0xf] %vm204_vm2, %v197_v7 }
  0xae   : > { %v214_v8 = vpop.permute.xlu1 %213 }
  0xaf   : > { %v199_v9 = vpop.permute.xlu0 %198  ;;  %v216_v10 = vsel %vm215_vm3, %v212_v6, %v214_v8  ;;  %221 = vst.msk [vmem:[#allocation2 + $0x18] sm:$0xf] %vm220_vm4, %v214_v8 }
  0xb0   : > { %v201_v11 = vsel %vm200_vm5, %v197_v7, %v199_v9  ;;  %219 = vst [vmem:[#allocation2 + $0x10] sm:$0xf] %v216_v10 }
  0xb1   : > { %206 = vst [vmem:[#allocation2 + $0x8] sm:$0xf] %v201_v11 }
  0xb3   : > { %v222_v14 = vld [vmem:[#allocation2] sm:$0xff] }
  0xb6   : > { %v225_v12 = vld [vmem:[#allocation2 + $0x18] sm:$0xf] }
  0xb7   : > { %v224_v15 = vld [vmem:[#allocation2 + $0x10] sm:$0xf] }
  0xb8   : > { %v223_v13 = vld [vmem:[#allocation2 + $0x8] sm:$0xff]  ;;  %v424_v17 = vpack.c.bf16 %v224_v15, %v222_v14 }
  0xb9   : > { %v421_v16 = vpack.c.bf16 %v225_v12, %v223_v13 }
  0xbb   : > { %423 = vmatprep.subr.msk.bf16.mxu0 %vm422_vm8, %v421_v16 }
  0xbc   : > { %426 = vmatpush1.bf16.msk.msra.mxu0 %vm422_vm8, %v424_v17 }
  0xbf   : > { %413 = vmatmul.mubr.msk.f32.vlgmr.msra.gmra.mrb[0].mxu0 %vm231_vm9, %v191_v18 }
  0xc0   : > { %v229_v19 = vpop.permute.xlu0 %228 }
 0x192   : > { %v308_v20 = vpop.f32.mrb[0].mxu0 }
 0x193   : > { %v309_v21 = vadd.f32 %v308_v20, %v229_v19  ;;  %v310_v22 = vpop.f32.mrb[1].mxu0 }
 0x194   : > { %v311_v23 = vadd.f32 %v310_v22, %v229_v19 }
 0x195   : > { %v313_v24 = vmax.f32 %v309_v21, 0.0 }
 0x196   : > { %v314_v25 = vmax.f32 %v311_v23, 0.0 }
 0x197   : > { %315 = vst [vmem:[%s186_s19] sm:$0xff] %v313_v24 }
 0x198   : > { %316 = vst [vmem:[%s186_s19 + $0x8] sm:$0xff] %v314_v25 }
 0x199   : > { %524 = shalt.err (!%p521_p4)
}
 0x19a   : > { %s525_s29 = scalar_lea.hbm %s730_s27, 256  ;;  %s529_s7 = scalar_lea.hbm %s777_s3, 512 }
 0x19b   : > { %p526_p5 = scmp.ne.s32.totalorder %s730_s27, %s525_s29  ;;  %p530_p0 = scmp.lt.u32.totalorder %s730_s27, %s777_s3 }
 0x19c   : > { %p531_p1 = scmp.lt.u32.totalorder %s529_s7, %s525_s29  ;;  %p533_p6 = scmp.lt.u32.totalorder %s525_s29, %s730_s27 }
 0x19d   : > { %p527_p8 = pnand %p526_p5, %p786_p11 }
 0x19e   : > { %p532_p3 = por %p531_p1, %p530_p0 }
 0x19f   : > { %p528_p9 = pneg %p527_p8 }
 0x1a0   : > { %p534_p12 = por %p533_p6, %p532_p3 }
 0x1a2   : > { %p535_p13 = pnand %p534_p12, %p528_p9 }
 0x1a4   : > { %538 = shalt.err (!%p535_p13)
}
 0x1a5   : > { %429 = dma.vmem_to_hbm [thread:$0]  (%p786_p11), %s732_s20, 256, %s730_s27, %s318_s28  }
 0x1a6 PF: > { %s344_s10 = sand.u32 1, %s565_s12   ;;  %p787_p7 = scmp.ne.s32.totalorder %s782_s25, 0 }
 0x1a7   : > { %p788_p10 = scmp.ge.s32.totalorder %s577_s15, 2  ;;  %s345_s11 = scalar_lea.sflag [#allocation5], %s344_s10 }
 0x1a9   : > { %p436_p2 = pnand %p788_p10, %p787_p7 }
 0x1ab   : > { %560 = dma.done.wait (!%p436_p2), %s345_s11, 256  }
 0x1ac   : > { %562 = vsyncadd (!%p436_p2), %s345_s11, 4294967040  ;;  %p16_p4 = scmp.ge.s32.totalorder %s631_s18, 4   ;;  %s789_s12 = smov %s569_s13 }
 0x1ad   : > { %s790_s13 = smov %s573_s14  ;;  %s791_s14 = smov %s643_s21 }
 0x1ae   : > { %s792_s15 = smov %s631_s18  ;;  %18 = sbr.rel (!%p16_p4) target bundleno = 5 (0x5), region = 77 }
 0x1b5   :  { %350 = vsyncpa [#allocation4], 1 }
 0x1b6   :  { %352 = vsyncpa [#allocation4 + $0x1], 1 }
 0x1b7   :  { %353 = vsyncpa [#allocation5], 1 }
 0x1b8   :  { %355 = vsyncpa [#allocation5 + $0x1], 1 }

</bundles_post_ra>
